<compile_context>
chip_gen: v6e
topology: v6e:2x2x1
jax: 0.10.0
libtpu: 0.0.40
codegen_flags: <defaults>
</compile_context>

<pallas_src>
import functools

import jax
import jax.numpy as jnp
from jax.experimental import pallas as pl
from jax.experimental.pallas import tpu as pltpu


def _round_up(x: int, m: int) -> int:
    return (x + m - 1) // m * m


def _tpu_defaults():
    """(block_bytes, vmem_limit_bytes, n_splits) per TPU generation."""
    kind = ""
    try:
        dev = jax.devices()[0]
        if dev.platform == "tpu":
            kind = dev.device_kind.lower()
    except Exception:
        pass
    if "v7" in kind:
        # 64 MiB physical VMEM, 2 TensorCores/chip -> split the row range.
        return 4 * 1024 * 1024, 48 * 1024 * 1024, 2
    if "v4" in kind or "v5" in kind or "v6" in kind:
        # 128 MiB physical VMEM, single TensorCore -> bigger blocks, no split.
        return 8 * 1024 * 1024, 80 * 1024 * 1024, 1
    # Unknown chip: size everything for the smallest VMEM (64 MiB).
    return 4 * 1024 * 1024, 40 * 1024 * 1024, 1


def _mse_kernel(x_ref, t_ref, o_ref, *,
                n_rows, n_cols, tile_rows, tile_cols, row_tiles,
                row_mask, col_mask):
    c = pl.program_id(0)            # core-split axis ("parallel")
    i = pl.program_id(1)            # row-tile axis   ("arbitrary", reduction)
    j = pl.program_id(2)            # col-tile axis   ("arbitrary", reduction)

    # Output block index (c,0,0) is constant across the i/j reduction axes, so
    # the block stays resident in VMEM: accumulate straight into it.
    @pl.when((i == 0) & (j == 0))
    def _():
        o_ref[...] = jnp.zeros_like(o_ref)

    # Cast each operand to f32 before subtracting (accuracy; avoids bf16 VPU
    # emulation on v5e for low-precision inputs).
    diff = x_ref[...].astype(jnp.float32) - t_ref[...].astype(jnp.float32)
    sq = diff * diff

    def fold(v):
        # Lane-parallel partial accumulation: fold the row tile onto 8
        # sublanes (pure VPU adds, no per-step cross-lane reduce).
        return v.reshape(tile_rows // 8, 8, tile_cols).sum(axis=0)[None]

    if not (row_mask or col_mask):
        o_ref[...] += fold(sq)
        return

    # Boundary-only masking: interior tiles skip iota/compare/select entirely.
    blk_row = c * row_tiles + i
    conds = []
    if row_mask:
        conds.append((blk_row + 1) * tile_rows > n_rows)
    if col_mask:
        conds.append((j + 1) * tile_cols > n_cols)
    boundary = conds[0]
    for extra in conds[1:]:
        boundary = boundary | extra

    @pl.when(boundary)
    def _():
        s = sq
        if row_mask:
            rid = blk_row * tile_rows + jax.lax.broadcasted_iota(
                jnp.int32, (tile_rows, 1), 0)
            s = jnp.where(rid < n_rows, s, 0.0)
        if col_mask:
            cid = j * tile_cols + jax.lax.broadcasted_iota(
                jnp.int32, (1, tile_cols), 1)
            s = jnp.where(cid < n_cols, s, 0.0)
        o_ref[...] += fold(s)

    @pl.when(jnp.logical_not(boundary))
    def _():
        o_ref[...] += fold(sq)


def mse_loss(x, t, *, block_bytes=None, n_splits=None, vmem_limit_bytes=None):
    """mean over batch of per-row sum of squared differences (2-D inputs)."""
    assert x.shape == t.shape and x.ndim == 2
    n, d = x.shape
    itemsize = jnp.dtype(x.dtype).itemsize

    def_block, def_vmem, def_splits = _tpu_defaults()
    block_bytes = def_block if block_bytes is None else block_bytes
    vmem_limit_bytes = def_vmem if vmem_limit_bytes is None else vmem_limit_bytes
    n_splits = def_splits if n_splits is None else n_splits

    # Sub-32-bit dtypes pack along sublanes: keep row tiles a multiple of the
    # packed group (8 for f32, 16 for bf16/f16, 32 for int8/fp8).
    packing = max(1, 4 // max(1, itemsize))
    sublane = 8 * packing

    # ---- byte-budgeted tiling (HBM-bound: want big, contiguous blocks) ----
    if sublane * d * itemsize <= block_bytes:
        tile_cols = d                                  # full feature dim
        tile_rows = (block_bytes // (d * itemsize)) // sublane * sublane
        tile_rows = max(sublane, min(tile_rows, _round_up(n, sublane)))
    else:
        # Extremely wide rows: tile the feature dim too.
        # (Output stays (8, tile_cols) wide here; a final lane fold to 128
        #  lanes is possible but this branch is rarely exercised.)
        tile_rows = sublane
        tile_cols = max(128, (block_bytes // (sublane * itemsize)) // 128 * 128)

    col_tiles = pl.cdiv(d, tile_cols)
    total_row_tiles = pl.cdiv(n, tile_rows)
    n_splits = max(1, min(n_splits, total_row_tiles))

    # Balance the per-core split (avoid a fully-masked phantom row strip) by
    # nudging tile_rows down -- but never below half the byte budget.
    if n_splits > 1 and total_row_tiles % n_splits != 0:
        tr = tile_rows - sublane
        while tr >= max(sublane, tile_rows // 2):
            if pl.cdiv(n, tr) % n_splits == 0:
                tile_rows = tr
                total_row_tiles = pl.cdiv(n, tr)
                break
            tr -= sublane

    row_tiles = pl.cdiv(total_row_tiles, n_splits)     # row tiles per split
    last_row_block = total_row_tiles - 1

    row_mask = (n_splits * row_tiles * tile_rows) != n
    col_mask = (col_tiles * tile_cols) != d

    def in_map(c, i, j):
        # Clamp phantom row tiles (fully masked out in the kernel); when
        # col_tiles == 1 this also dedups the redundant DMA.
        return (jnp.minimum(c * row_tiles + i, last_row_block), j)

    kernel = functools.partial(
        _mse_kernel,
        n_rows=n, n_cols=d, tile_rows=tile_rows, tile_cols=tile_cols,
        row_tiles=row_tiles, row_mask=row_mask, col_mask=col_mask)

    out_bytes = n_splits * 8 * tile_cols * 4
    partials = pl.pallas_call(
        kernel,
        out_shape=jax.ShapeDtypeStruct((n_splits, 8, tile_cols), jnp.float32),
        grid=(n_splits, row_tiles, col_tiles),
        in_specs=[
            pl.BlockSpec((tile_rows, tile_cols), in_map),
            pl.BlockSpec((tile_rows, tile_cols), in_map),
        ],
        out_specs=pl.BlockSpec((1, 8, tile_cols), lambda c, i, j: (c, 0, 0)),
        compiler_params=pltpu.CompilerParams(
            dimension_semantics=("parallel", "arbitrary", "arbitrary"),
            vmem_limit_bytes=vmem_limit_bytes,
        ),
        cost_estimate=pl.CostEstimate(
            flops=3 * n * d,
            transcendentals=0,
            bytes_accessed=2 * n * d * itemsize + out_bytes,
        ),
    )(x, t)

    # Tiny final cross-lane reduction + mean-over-batch outside the kernel.
    return jnp.sum(partials) / n


if __name__ == "__main__":
    key = jax.random.PRNGKey(0)
    k1, k2 = jax.random.split(key)

    N, D = 16, 128  # batch=16, features=128
    x = jax.random.normal(k1, (N, D), dtype=jnp.float32)
    t = jax.random.normal(k2, (N, D), dtype=jnp.float32)

    loss = jax.block_until_ready(mse_loss(x, t))
    ref = jnp.mean(jnp.sum((x - t) ** 2, axis=1))
    assert jnp.allclose(loss, ref, rtol=1e-5, atol=1e-5), (loss, ref)

    # Non-divisible batch (exercises the boundary-masked path; no padding copies).
    N2 = 10
    x2 = jax.random.normal(k1, (N2, D), dtype=jnp.float32)
    t2 = jax.random.normal(k2, (N2, D), dtype=jnp.float32)
    loss2 = jax.block_until_ready(mse_loss(x2, t2))
    ref2 = jnp.mean(jnp.sum((x2 - t2) ** 2, axis=1))
    assert jnp.allclose(loss2, ref2, rtol=1e-5, atol=1e-5), (loss2, ref2)

    print("KERNEL_OK")
</pallas_src>

<mosaic_0001>
module attributes {stable_mosaic.version = 11 : i64} {
  func.func @_mse_kernel(%arg0: i32, %arg1: i32, %arg2: i32, %arg3: memref<16x128xf32, #tpu.memory_space<vmem>>, %arg4: memref<16x128xf32, #tpu.memory_space<vmem>>, %arg5: memref<1x8x128xf32, #tpu.memory_space<vmem>>) attributes {dimension_semantics = [#tpu.dimension_semantics<parallel>, #tpu.dimension_semantics<arbitrary>, #tpu.dimension_semantics<arbitrary>], iteration_bounds = array<i64: 1, 1, 1>, scalar_prefetch = 0 : i64, scratch_operands = 0 : i64, tpu.core_type = #tpu.core_type<tc>, window_params = [{transform_indices = @transform_0, window_bounds = array<i64: 16, 128>}, {transform_indices = @transform_1, window_bounds = array<i64: 16, 128>}, {transform_indices = @transform_2, window_bounds = array<i64: 1, 8, 128>}]} {
    %c0_i32 = arith.constant 0 : i32
    %0 = arith.cmpi eq, %arg1, %c0_i32 : i32
    %c0_i32_0 = arith.constant 0 : i32
    %1 = arith.cmpi eq, %arg2, %c0_i32_0 : i32
    %2 = arith.andi %0, %1 : i1
    %3 = arith.extui %2 : i1 to i32
    %c0_i32_1 = arith.constant 0 : i32
    %4 = arith.cmpi ne, %3, %c0_i32_1 : i32
    scf.if %4 {
      %cst_11 = arith.constant 0.000000e+00 : f32
      %15 = vector.broadcast %cst_11 : f32 to vector<1x8x128xf32>
      %c0_12 = arith.constant 0 : index
      %c0_13 = arith.constant 0 : index
      %c0_14 = arith.constant 0 : index
      %16 = vector.load %arg5[%c0_12, %c0_13, %c0_14] : memref<1x8x128xf32, #tpu.memory_space<vmem>>, vector<1x8x128xf32>
      tpu.vector_store %arg5[%c0_12, %c0_13, %c0_14], %15 {strides = array<i32>} : memref<1x8x128xf32, #tpu.memory_space<vmem>>, vector<1x8x128xf32>,
    } else {
    }
    %c0 = arith.constant 0 : index
    %c0_2 = arith.constant 0 : index
    %5 = vector.load %arg3[%c0, %c0_2] : memref<16x128xf32, #tpu.memory_space<vmem>>, vector<16x128xf32>
    %c0_3 = arith.constant 0 : index
    %c0_4 = arith.constant 0 : index
    %6 = vector.load %arg4[%c0_3, %c0_4] : memref<16x128xf32, #tpu.memory_space<vmem>>, vector<16x128xf32>
    %7 = arith.subf %5, %6 : vector<16x128xf32>
    %8 = arith.mulf %7, %7 : vector<16x128xf32>
    %c0_5 = arith.constant 0 : index
    %c0_6 = arith.constant 0 : index
    %c0_7 = arith.constant 0 : index
    %9 = vector.load %arg5[%c0_5, %c0_6, %c0_7] : memref<1x8x128xf32, #tpu.memory_space<vmem>>, vector<1x8x128xf32>
    %10 = vector.shape_cast %8 : vector<16x128xf32> to vector<2x8x128xf32>
    %cst = arith.constant dense<0.000000e+00> : vector<8x128xf32>
    %11 = vector.multi_reduction <add>, %10, %cst [0] : vector<2x8x128xf32> to vector<8x128xf32>
    %12 = vector.shape_cast %11 : vector<8x128xf32> to vector<1x8x128xf32>
    %13 = arith.addf %9, %12 : vector<1x8x128xf32>
    %c0_8 = arith.constant 0 : index
    %c0_9 = arith.constant 0 : index
    %c0_10 = arith.constant 0 : index
    %14 = vector.load %arg5[%c0_8, %c0_9, %c0_10] : memref<1x8x128xf32, #tpu.memory_space<vmem>>, vector<1x8x128xf32>
    tpu.vector_store %arg5[%c0_8, %c0_9, %c0_10], %13 {strides = array<i32>} : memref<1x8x128xf32, #tpu.memory_space<vmem>>, vector<1x8x128xf32>,
    return
  }
  func.func @transform_0(%arg0: i32, %arg1: i32, %arg2: i32) -> (i32, i32) {
    %c1_i32 = arith.constant 1 : i32
    %0 = arith.muli %arg0, %c1_i32 : i32
    %1 = arith.addi %0, %arg1 : i32
    %c0_i32 = arith.constant 0 : i32
    %2 = arith.minsi %1, %c0_i32 : i32
    %c0_i32_0 = arith.constant 0 : i32
    return %2, %arg2 : i32, i32
  }
  func.func @transform_1(%arg0: i32, %arg1: i32, %arg2: i32) -> (i32, i32) {
    %c1_i32 = arith.constant 1 : i32
    %0 = arith.muli %arg0, %c1_i32 : i32
    %1 = arith.addi %0, %arg1 : i32
    %c0_i32 = arith.constant 0 : i32
    %2 = arith.minsi %1, %c0_i32 : i32
    %c0_i32_0 = arith.constant 0 : i32
    return %2, %arg2 : i32, i32
  }
  func.func @transform_2(%arg0: i32, %arg1: i32, %arg2: i32) -> (i32, i32, i32) {
    %c0_i32 = arith.constant 0 : i32
    %c0_i32_0 = arith.constant 0 : i32
    %c0_i32_1 = arith.constant 0 : i32
    return %arg0, %c0_i32, %c0_i32_0 : i32, i32, i32
  }
}

</mosaic_0001>

<bundles_post_ra>
// kernel: tpu_custom_call.1
= control target key start
LH: loop header
LB: loop body
LE: loop exit
PB: predicated region body
PF: predicated region fallthrough
CT: control target
= control target key end

     0   :  { %7 = vsyncpa [#allocation3], 0  ;;  %s200_s0 = inlined_call_operand.hbm [shape: f32[16,128], index: 0, kind: input, shape index: {}]   ;;  %s201_s1 = inlined_call_operand.hbm [shape: f32[16,128], index: 1, kind: input, shape index: {}]   ;;  %s202_s2 = inlined_call_operand.hbm [shape: f32[1,8,128], index: 2, kind: output, shape index: {}]  }
   0x1   :  { %8 = vsyncpa [#allocation6], 0 }
   0x2   :  { %9 = vsyncpa [#allocation4], 0  ;;  %s171_s9 = smov [#allocation2]  }
   0x3   :  { %s21_s10 = sshll.u32 %s171_s9, 4  ;;  %s22_s10 = int_to_ptr.vmem [resolvable:$true] %s21_s10 }
   0x4   :  { %s113_s11 = scalar_lea.vmem %s22_s10, 256  ;;  %p118_p1 = scmp.lt.s32.totalorder %s22_s10, %s22_s10 }
   0x5   :  { %p114_p0 = scmp.ne.s32.totalorder %s22_s10, %s113_s11  ;;  %p119_p2 = scmp.lt.s32.totalorder %s113_s11, %s113_s11 }
   0x7   :  { %p120_p3 = por %p119_p2, %p118_p1 }
   0x9   :  { %p121_p4 = pnand %p120_p3, %p114_p0 }
   0xb   :  { %124 = shalt.err (!%p121_p4)
}
   0xc   :  { %s172_s12 = smov 128   ;;  %s173_s13 = smov 8  }
   0xd   :  { %27 = dma.hbm_to_vmem [thread:$0]  %s200_s0, 256, %s22_s10, [#allocation3], %s172_s12, %s172_s12, %s173_s13  }
   0xe   :  { %s174_s16 = smov [#allocation5]  }
   0xf   :  { %s39_s17 = sshll.u32 %s174_s16, 4  ;;  %s40_s17 = int_to_ptr.vmem [resolvable:$true] %s39_s17 }
  0x10   :  { %s133_s18 = scalar_lea.vmem %s40_s17, 256  ;;  %p138_p6 = scmp.lt.s32.totalorder %s40_s17, %s40_s17 }
  0x11   :  { %p134_p5 = scmp.ne.s32.totalorder %s40_s17, %s133_s18  ;;  %p139_p7 = scmp.lt.s32.totalorder %s133_s18, %s133_s18 }
  0x13   :  { %p140_p8 = por %p139_p7, %p138_p6 }
  0x15   :  { %p141_p9 = pnand %p140_p8, %p134_p5 }
  0x17   :  { %144 = shalt.err (!%p141_p9)
}
  0x18   :  { %45 = dma.hbm_to_vmem [thread:$0]  %s201_s1, 256, %s40_s17, [#allocation6], %s172_s12, %s172_s12, %s173_s13  }
  0x19   :  { %165 = dma.done.wait [#allocation3], 256  }
  0x1a   :  { %166 = vsyncadd [#allocation3], 4294967040 }
  0x1b   :  { %167 = dma.done.wait [#allocation6], 256  }
  0x1c   :  { %168 = vsyncadd [#allocation6], 4294967040  ;;  %v67_v0 = vld [vmem:[#allocation2] sm:$0xff]  ;;  %v68_v1 = vld [vmem:[#allocation2 + $0x8] sm:$0xff]  ;;  %s175_s0 = smov [#allocation7]  }
  0x1d   :  { %v69_v2 = vld [vmem:[#allocation5] sm:$0xff]  ;;  %v70_v3 = vld [vmem:[#allocation5 + $0x8] sm:$0xff]  ;;  %s85_s21 = sshll.u32 %s175_s0, 4  ;;  %s86_s21 = int_to_ptr.vmem [resolvable:$true] %s85_s21 }
  0x1e   :  { %v71_v4 = vsub.f32 %v67_v0, %v69_v2  ;;  %v72_v5 = vsub.f32 %v68_v1, %v70_v3  ;;  %s145_s22 = scalar_lea.vmem %s86_s21, 128  ;;  %p150_p11 = scmp.lt.s32.totalorder %s86_s21, %s86_s21 }
  0x1f   :  { %p146_p10 = scmp.ne.s32.totalorder %s86_s21, %s145_s22  ;;  %p151_p12 = scmp.lt.s32.totalorder %s145_s22, %s145_s22 }
  0x20   :  { %v73_v6 = vmul.f32 %v71_v4, %v71_v4  ;;  %v74_v7 = vmul.f32 %v72_v5, %v72_v5 }
  0x21   :  { %p152_p13 = por %p151_p12, %p150_p11 }
  0x22   :  { %v76_v8 = vadd.f32 %v74_v7, %v73_v6 }
  0x23   :  { %p153_p0 = pnand %p152_p13, %p146_p10 }
  0x24   :  { %78 = vst [vmem:[#allocation7] sm:$0xff] %v76_v8 }
  0x25   :  { %156 = shalt.err (!%p153_p0)
}
  0x26   :  { %88 = dma.vmem_to_hbm [thread:$0]  %s86_s21, 128, %s202_s2, [#allocation4]  }
  0x27   :  { %169 = dma.done.wait [#allocation4], 128  }
  0x28   :  { %170 = vsyncadd [#allocation4], 4294967168 }
  0x29   :  { %92 = vsyncpa [#allocation3], 1 }
  0x2a   :  { %93 = vsyncpa [#allocation6], 1 }
  0x2b   :  { %94 = vsyncpa [#allocation4], 1 }

</bundles_post_ra>
